<compile_context>
chip_gen: v6e
topology: v6e:2x2x1
jax: 0.10.0
libtpu: 0.0.40
codegen_flags: <defaults>
</compile_context>

<pallas_src>
import functools
import math

import jax
import jax.numpy as jnp
from jax.experimental import pallas as pl
from jax.experimental.pallas import tpu as pltpu


def _round_up(x, n):
    return ((x + n - 1) // n) * n


# --------------------------------------------------------------------------- kernel

def _arcface_kernel(lab_ref, x_ref, inv_x_ref, wt_ref, inv_w_ref, o_ref,
                    *, s, cos_m, sin_m):
    j = pl.program_id(0)                      # class-tile index (outer grid axis)

    x = x_ref[...]                            # (tm, D)  bf16
    wt = wt_ref[...]                          # (D, tn)  bf16 (pre-transposed W)
    inv_x = inv_x_ref[...]                    # (tm, 1)  f32  precomputed 1/||x||
    inv_w = inv_w_ref[...]                    # (1, tn)  f32  precomputed 1/||w||
    lab = lab_ref[...]                        # (tm, 1)  int32

    # bf16 matmul on the MXU, f32 accumulate.  W already in (D, tn) layout so this is
    # a plain contraction -- no in-kernel transpose.
    dots = jax.lax.dot_general(
        x, wt, dimension_numbers=(((1,), (0,)), ((), ())),
        preferred_element_type=jnp.float32)   # (tm, tn) f32

    # Fold both normalizations into one post-matmul scale, clamp like the PyTorch code.
    cosine = jnp.clip(dots * inv_x * inv_w, -1.0 + 1e-7, 1.0 - 1e-7)
    tm, tn = cosine.shape

    # Boolean target mask from a LOCAL column iota (no full-tile +j*tn add, no float
    # one-hot kept live).
    local_lab = lab - j * tn                                        # (tm, 1)
    col = jax.lax.broadcasted_iota(jnp.int32, (tm, tn), 1)
    mask = col == local_lab                                         # (tm, tn) bool

    # Margin path only on the gathered target cosine (tm, 1):
    #   cos(theta + m) = cos(theta)*cos(m) - sin(theta)*sin(m),  sin(theta) >= 0.
    cos_t = jnp.sum(jnp.where(mask, cosine, 0.0), axis=1, keepdims=True)
    sin_t = jnp.sqrt(jnp.maximum(1.0 - cos_t * cos_t, 0.0))
    delta = cos_t * cos_m - sin_t * sin_m - cos_t                   # (tm, 1)

    o_ref[...] = (s * jnp.where(mask, cosine + delta, cosine)).astype(o_ref.dtype)


# --------------------------------------------------------------------- tile selection

_VMEM_WS_BUDGET = 32 * 1024 * 1024   # double-buffered working-set budget (safe v5e/v6e/v7x)


def _working_set_bytes(tm, tn, d):
    x_b = tm * d * 2                 # bf16 x tile
    w_b = d * tn * 2                 # bf16 W^T tile
    o_b = tm * tn * 4                # f32 out tile
    small = tm * 4 * 2 + tn * 4      # labels + inv_x + inv_w
    return 2 * (x_b + w_b + o_b + small)   # x2: double buffering


def _select_tiles(batch, classes, d, tm=256, tn=1024):
    tm = min(tm, _round_up(batch, 8))
    tn = min(tn, _round_up(classes, 128))
    while _working_set_bytes(tm, tn, d) > _VMEM_WS_BUDGET and tn > 128:
        tn = max(128, tn // 2)
    while _working_set_bytes(tm, tn, d) > _VMEM_WS_BUDGET and tm > 16:
        tm = max(16, _round_up(tm // 2, 16))
    return tm, tn


# ------------------------------------------------------------------------- wrappers

def arcface_prepare_weight(weight, tn):
    """Once-per-weight-update preprocessing (hoist out of the per-step path)."""
    C, D = weight.shape
    C_pad = _round_up(C, tn)
    wf = weight.astype(jnp.float32)
    inv_w = jax.lax.rsqrt(jnp.maximum(jnp.sum(wf * wf, axis=1), 1e-24))     # (C,)
    inv_w = jnp.pad(inv_w, (0, C_pad - C)).reshape(1, C_pad)                # pad -> 0 cosine
    wt = jnp.pad(wf, ((0, C_pad - C), (0, 0))).T.astype(jnp.bfloat16)       # (D, C_pad)
    return wt, inv_w


def arcface_forward_prepared(x, label, wt, inv_w, *, s=30.0, m=0.5, tm=256, tn=1024):
    B, D = x.shape
    D2, C_pad = wt.shape
    assert D == D2, "in_features mismatch"
    assert C_pad % tn == 0

    B_pad = _round_up(B, tm)
    xf = x.astype(jnp.float32)
    inv_x = jax.lax.rsqrt(jnp.maximum(jnp.sum(xf * xf, axis=1), 1e-24))     # (B,)
    inv_x = jnp.pad(inv_x, (0, B_pad - B)).reshape(B_pad, 1)
    xb = jnp.pad(xf, ((0, B_pad - B), (0, 0))).astype(jnp.bfloat16)
    labp = jnp.pad(label.reshape(-1).astype(jnp.int32),
                   (0, B_pad - B)).reshape(B_pad, 1)

    grid = (C_pad // tn, B_pad // tm)   # class axis OUTER -> W streamed once per call

    kernel = functools.partial(_arcface_kernel, s=float(s),
                               cos_m=math.cos(m), sin_m=math.sin(m))

    vmem_limit = int(min(56 * 1024 * 1024,
                         max(32 * 1024 * 1024,
                             _working_set_bytes(tm, tn, D) + 16 * 1024 * 1024)))

    return pl.pallas_call(
        kernel,
        out_shape=jax.ShapeDtypeStruct((B_pad, C_pad), jnp.float32),
        grid=grid,
        in_specs=[
            pl.BlockSpec((tm, 1), lambda j, i: (i, 0)),   # labels
            pl.BlockSpec((tm, D), lambda j, i: (i, 0)),   # x rows (bf16)
            pl.BlockSpec((tm, 1), lambda j, i: (i, 0)),   # 1/||x||  (f32)
            pl.BlockSpec((D, tn), lambda j, i: (0, j)),   # W^T class tile (single-pass)
            pl.BlockSpec((1, tn), lambda j, i: (0, j)),   # 1/||w||  (f32)
        ],
        out_specs=pl.BlockSpec((tm, tn), lambda j, i: (i, j)),
        compiler_params=pltpu.CompilerParams(
            dimension_semantics=("parallel", "arbitrary"),
            vmem_limit_bytes=vmem_limit),
    )(labp, xb, inv_x, wt, inv_w)


def arcface_forward(x, weight, label, s=30.0, m=0.5, tm=256, tn=1024):
    B, D = x.shape
    C, _ = weight.shape
    tm, tn = _select_tiles(B, C, D, tm, tn)
    # In a training loop, hoist arcface_prepare_weight to once per weight update.
    wt, inv_w = arcface_prepare_weight(weight, tn)
    out = arcface_forward_prepared(x, label, wt, inv_w, s=s, m=m, tm=tm, tn=tn)
    return out[:B, :C]


# ----------------------------------------------------------------------- references

def _arcface_reference(x, weight, label, s=30.0, m=0.5):
    """Exact f32 port of the PyTorch forward."""
    x_n = x / jnp.maximum(jnp.linalg.norm(x, axis=1, keepdims=True), 1e-12)
    w_n = weight / jnp.maximum(jnp.linalg.norm(weight, axis=1, keepdims=True), 1e-12)
    cosine = jnp.clip(x_n @ w_n.T, -1.0 + 1e-7, 1.0 - 1e-7)
    theta = jnp.arccos(cosine)
    one_hot = jax.nn.one_hot(label, weight.shape[0], dtype=jnp.float32)
    return (jnp.cos(theta) * (1.0 - one_hot) + jnp.cos(theta + m) * one_hot) * s


def _arcface_reference_bf16_matmul(x, weight, label, s=30.0, m=0.5):
    """Mirrors the kernel numerics (bf16 matmul inputs, f32 norms folded post-matmul)."""
    xq = x.astype(jnp.bfloat16).astype(jnp.float32)
    wq = weight.astype(jnp.bfloat16).astype(jnp.float32)
    inv_x = jax.lax.rsqrt(jnp.maximum(jnp.sum(x * x, axis=1, keepdims=True), 1e-24))
    inv_w = jax.lax.rsqrt(jnp.maximum(jnp.sum(weight * weight, axis=1), 1e-24))
    cosine = jnp.clip((xq @ wq.T) * inv_x * inv_w[None, :], -1.0 + 1e-7, 1.0 - 1e-7)
    cos_t = jnp.take_along_axis(cosine, label.reshape(-1, 1), axis=1)
    sin_t = jnp.sqrt(jnp.maximum(1.0 - cos_t * cos_t, 0.0))
    delta = cos_t * math.cos(m) - sin_t * math.sin(m) - cos_t
    one_hot = jax.nn.one_hot(label, weight.shape[0], dtype=jnp.float32)
    return s * (cosine + one_hot * delta)


# ------------------------------------------------------------------------------ main

if __name__ == "__main__":
    B = 8
    in_features = 32
    out_features = 16
    s_scale, margin = 30.0, 0.5

    key = jax.random.PRNGKey(0)
    kx, kw, kl = jax.random.split(key, 3)

    x = jax.random.normal(kx, (B, in_features), dtype=jnp.float32)

    # Xavier-uniform init for weight (out_features, in_features).
    bound = math.sqrt(6.0 / (in_features + out_features))
    weight = jax.random.uniform(
        kw, (out_features, in_features), dtype=jnp.float32,
        minval=-bound, maxval=bound)

    label = jax.random.randint(kl, (B,), 0, out_features, dtype=jnp.int32)

    out = arcface_forward(x, weight, label, s=s_scale, m=margin)
    out = jax.block_until_ready(out)
    assert out.shape == (B, out_features) and out.dtype == jnp.float32

    # Tight check against a reference with matching (bf16-input matmul) numerics.
    ref_q = _arcface_reference_bf16_matmul(x, weight, label, s=s_scale, m=margin)
    err_q = float(jnp.max(jnp.abs(out - ref_q)))
    assert err_q < 5e-3, f"mismatch vs bf16-matmul reference: {err_q}"

    # Loose check against the exact f32 PyTorch-equivalent reference (bf16 MXU inputs
    # on s=30-scaled logits).
    ref = _arcface_reference(x, weight, label, s=s_scale, m=margin)
    err = float(jnp.max(jnp.abs(out - ref)))
    assert err < 3e-1, f"mismatch vs f32 reference: {err}"

    print("KERNEL_OK")
</pallas_src>

<mosaic_0001>
module attributes {stable_mosaic.version = 11 : i64} {
  func.func @_arcface_kernel(%arg0: i32, %arg1: i32, %arg2: memref<8x1xi32, #tpu.memory_space<vmem>>, %arg3: memref<8x32xbf16, #tpu.memory_space<vmem>>, %arg4: memref<8x1xf32, #tpu.memory_space<vmem>>, %arg5: memref<32x128xbf16, #tpu.memory_space<vmem>>, %arg6: memref<1x128xf32, #tpu.memory_space<vmem>>, %arg7: memref<8x128xf32, #tpu.memory_space<vmem>>) attributes {dimension_semantics = [#tpu.dimension_semantics<parallel>, #tpu.dimension_semantics<arbitrary>], iteration_bounds = array<i64: 1, 1>, scalar_prefetch = 0 : i64, scratch_operands = 0 : i64, tpu.core_type = #tpu.core_type<tc>, window_params = [{transform_indices = @transform_0, window_bounds = array<i64: 8, 1>}, {transform_indices = @transform_1, window_bounds = array<i64: 8, 32>}, {transform_indices = @transform_2, window_bounds = array<i64: 8, 1>}, {transform_indices = @transform_3, window_bounds = array<i64: 32, 128>}, {transform_indices = @transform_4, window_bounds = array<i64: 1, 128>}, {transform_indices = @transform_5, window_bounds = array<i64: 8, 128>}]} {
    %c0 = arith.constant 0 : index
    %c0_0 = arith.constant 0 : index
    %0 = vector.load %arg3[%c0, %c0_0] : memref<8x32xbf16, #tpu.memory_space<vmem>>, vector<8x32xbf16>
    %c0_1 = arith.constant 0 : index
    %c0_2 = arith.constant 0 : index
    %1 = vector.load %arg5[%c0_1, %c0_2] : memref<32x128xbf16, #tpu.memory_space<vmem>>, vector<32x128xbf16>
    %c0_3 = arith.constant 0 : index
    %c0_4 = arith.constant 0 : index
    %2 = vector.load %arg4[%c0_3, %c0_4] : memref<8x1xf32, #tpu.memory_space<vmem>>, vector<8x1xf32>
    %c0_5 = arith.constant 0 : index
    %c0_6 = arith.constant 0 : index
    %3 = vector.load %arg6[%c0_5, %c0_6] : memref<1x128xf32, #tpu.memory_space<vmem>>, vector<1x128xf32>
    %c0_7 = arith.constant 0 : index
    %c0_8 = arith.constant 0 : index
    %4 = vector.load %arg2[%c0_7, %c0_8] : memref<8x1xi32, #tpu.memory_space<vmem>>, vector<8x1xi32>
    %cst = arith.constant dense<0.000000e+00> : vector<8x128xf32>
    %5 = tpu.matmul %0, %1, %cst {dimension_numbers = #tpu.dot_dimension_numbers<[1], [0], [0], [1], [0, 0, 1, 1], [], []>} : vector<8x32xbf16>, vector<32x128xbf16>, vector<8x128xf32> -> vector<8x128xf32>
    %6 = vector.broadcast %2 : vector<8x1xf32> to vector<8x128xf32>
    %7 = arith.mulf %5, %6 : vector<8x128xf32>
    %8 = vector.broadcast %3 : vector<1x128xf32> to vector<8x128xf32>
    %9 = arith.mulf %7, %8 : vector<8x128xf32>
    %cst_9 = arith.constant -0.99999988 : f32
    %cst_10 = arith.constant 0.99999988 : f32
    %10 = vector.broadcast %cst_9 : f32 to vector<8x128xf32>
    %11 = arith.maximumf %10, %9 : vector<8x128xf32>
    %12 = vector.broadcast %cst_10 : f32 to vector<8x128xf32>
    %13 = arith.minimumf %12, %11 : vector<8x128xf32>
    %c128_i32 = arith.constant 128 : i32
    %14 = arith.muli %arg0, %c128_i32 : i32
    %15 = vector.broadcast %14 : i32 to vector<8x1xi32>
    %16 = arith.subi %4, %15 : vector<8x1xi32>
    %17 = tpu.iota {dimensions = array<i32: 1>} : vector<8x128xi32>
    %18 = vector.broadcast %16 : vector<8x1xi32> to vector<8x128xi32>
    %19 = arith.cmpi eq, %17, %18 : vector<8x128xi32>
    %cst_11 = arith.constant 0.000000e+00 : f32
    %20 = vector.broadcast %cst_11 : f32 to vector<8x128xf32>
    %21 = arith.select %19, %13, %20 : vector<8x128xi1>, vector<8x128xf32>
    %cst_12 = arith.constant dense<0.000000e+00> : vector<8xf32>
    %22 = vector.multi_reduction <add>, %21, %cst_12 [1] : vector<8x128xf32> to vector<8xf32>
    %23 = vector.shape_cast %22 : vector<8xf32> to vector<8x1xf32>
    %24 = arith.mulf %23, %23 : vector<8x1xf32>
    %cst_13 = arith.constant 1.000000e+00 : f32
    %25 = vector.broadcast %cst_13 : f32 to vector<8x1xf32>
    %26 = arith.subf %25, %24 : vector<8x1xf32>
    %cst_14 = arith.constant 0.000000e+00 : f32
    %27 = vector.broadcast %cst_14 : f32 to vector<8x1xf32>
    %28 = arith.maximumf %26, %27 : vector<8x1xf32>
    %29 = math.sqrt %28 : vector<8x1xf32>
    %cst_15 = arith.constant 0.87758255 : f32
    %30 = vector.broadcast %cst_15 : f32 to vector<8x1xf32>
    %31 = arith.mulf %23, %30 : vector<8x1xf32>
    %cst_16 = arith.constant 0.47942555 : f32
    %32 = vector.broadcast %cst_16 : f32 to vector<8x1xf32>
    %33 = arith.mulf %29, %32 : vector<8x1xf32>
    %34 = arith.subf %31, %33 : vector<8x1xf32>
    %35 = arith.subf %34, %23 : vector<8x1xf32>
    %36 = vector.broadcast %35 : vector<8x1xf32> to vector<8x128xf32>
    %37 = arith.addf %13, %36 : vector<8x128xf32>
    %38 = arith.select %19, %37, %13 : vector<8x128xi1>, vector<8x128xf32>
    %cst_17 = arith.constant 3.000000e+01 : f32
    %39 = vector.broadcast %cst_17 : f32 to vector<8x128xf32>
    %40 = arith.mulf %39, %38 : vector<8x128xf32>
    %c0_18 = arith.constant 0 : index
    %c0_19 = arith.constant 0 : index
    %41 = vector.load %arg7[%c0_18, %c0_19] : memref<8x128xf32, #tpu.memory_space<vmem>>, vector<8x128xf32>
    tpu.vector_store %arg7[%c0_18, %c0_19], %40 {strides = array<i32>} : memref<8x128xf32, #tpu.memory_space<vmem>>, vector<8x128xf32>,
    return
  }
  func.func @transform_0(%arg0: i32, %arg1: i32) -> (i32, i32) {
    %c0_i32 = arith.constant 0 : i32
    %c0_i32_0 = arith.constant 0 : i32
    return %arg1, %c0_i32 : i32, i32
  }
  func.func @transform_1(%arg0: i32, %arg1: i32) -> (i32, i32) {
    %c0_i32 = arith.constant 0 : i32
    %c0_i32_0 = arith.constant 0 : i32
    return %arg1, %c0_i32 : i32, i32
  }
  func.func @transform_2(%arg0: i32, %arg1: i32) -> (i32, i32) {
    %c0_i32 = arith.constant 0 : i32
    %c0_i32_0 = arith.constant 0 : i32
    return %arg1, %c0_i32 : i32, i32
  }
  func.func @transform_3(%arg0: i32, %arg1: i32) -> (i32, i32) {
    %c0_i32 = arith.constant 0 : i32
    %c0_i32_0 = arith.constant 0 : i32
    return %c0_i32, %arg0 : i32, i32
  }
  func.func @transform_4(%arg0: i32, %arg1: i32) -> (i32, i32) {
    %c0_i32 = arith.constant 0 : i32
    %c0_i32_0 = arith.constant 0 : i32
    return %c0_i32, %arg0 : i32, i32
  }
  func.func @transform_5(%arg0: i32, %arg1: i32) -> (i32, i32) {
    %c0_i32 = arith.constant 0 : i32
    return %arg1, %arg0 : i32, i32
  }
}

</mosaic_0001>

<bundles_post_ra>
// kernel: tpu_custom_call.1
= control target key start
LH: loop header
LB: loop body
LE: loop exit
PB: predicated region body
PF: predicated region fallthrough
CT: control target
= control target key end

     0   :  { %v192_v1 = vmov 0.0   ;;  %vm193_vm0 = vmmov 0   ;;  %v194_v4 = vmov 0   ;;  %s249_s0 = inlined_call_operand.vmem [shape: s32[8,1], index: 0, kind: input, shape index: {}]   ;;  %s250_s1 = inlined_call_operand.vmem [shape: bf16[8,32], index: 1, kind: input, shape index: {}]   ;;  %s251_s2 = inlined_call_operand.vmem [shape: f32[8,1], index: 2, kind: input, shape index: {}]   ;;  %s252_s3 = inlined_call_operand.vmem [shape: bf16[32,128], index: 3, kind: input, shape index: {}]   ;;  %s253_s4 = inlined_call_operand.vmem [shape: f32[1,128], index: 4, kind: input, shape index: {}]   ;;  %s254_s5 = inlined_call_operand.hbm [shape: f32[8,128], index: 5, kind: output, shape index: {}]  }
   0x1   :  { %v166_v0 = vld [vmem:[%s252_s3 + $0x8] sm:$0xff]   ;;  %153 = vmatprep.subr.bf16.mxu0 %v192_v1  ;;  %v167_v2 = vld [vmem:[%s252_s3] sm:$0xff]   ;;  %157 = vmatprep.mubr.msk.bf16.mxu0 %vm193_vm0, %v192_v1 }
   0x2   :  { %154 = vmatpush3.bf16.msra.mxu0 %v166_v0  ;;  %v27_v3 = vld [vmem:[%s251_s2] sm:$0xff]  ;;  %165 = vset.pattern.permute.xlu0 %v194_v4 }
   0x3   :  { %155 = vmatprep.subr.bf16.mxu0 %v192_v1 }
   0x4   :  { %10 = vsyncpa [#allocation3], 0  ;;  %88 = vperm.xlu0 %165, %v27_v3   ;;  %v29_v5 = vld [vmem:[%s249_s0] sm:$0xff]  ;;  %vm42_vm1 = vcmask 261120   ;;  %v104_v8 = vlaneseq  ;;  %s195_s0 = smov [#allocation2]  }
   0x5   :  { %v22_v6 = vld [vmem:[%s250_s1] sm:$0xf]  ;;  %s137_s1 = sshll.u32 %s195_s0, 4  ;;  %s138_s1 = int_to_ptr.vmem [resolvable:$true] %s137_s1 }
   0x6   :  { %156 = vmatpush3.bf16.msra.mxu0 %v167_v2  ;;  %v148_v9 = vld [vmem:[%s253_s4] ss:$0 sm:$0xff]  ;;  %v105_v12 = vand.u32 127, %v104_v8  ;;  %s170_s4 = scalar_lea.vmem %s138_s1, 128  ;;  %p175_p1 = scmp.lt.s32.totalorder %s138_s1, %s138_s1 }
   0x7   :  { %p171_p0 = scmp.ne.s32.totalorder %s138_s1, %s170_s4  ;;  %p176_p2 = scmp.lt.s32.totalorder %s170_s4, %s170_s4 }
   0x8   :  { %107 = vperm.xlu0 %165, %v29_v5  }
   0x9   :  { %158 = vmatmul.mubr.msk.bf16.vlgmr.msra.gmra.mxu0 %vm42_vm1, %v22_v6  ;;  %p177_p3 = por %p176_p2, %p175_p1 }
   0xb   :  { %p178_p4 = pnand %p177_p3, %p171_p0 }
  0x7f   :  { %v89_v7 = vpop.permute.xlu0 %88 }
  0x83   :  { %v108_v14 = vpop.permute.xlu0 %107 }
  0x84   :  { %vm109_vm2 = vcmp.eq.s32.totalorder %v105_v12, %v108_v14 }
  0xc9   :  { %v80_v10 = vpop.f32.mrf.mxu0 }
  0xca   :  { %v91_v11 = vmul.f32 %v89_v7, %v80_v10 }
  0xcb   :  { %v159_v13 = vpop.f32.mrf.mxu0 }
  0xcc   :  { %v98_v15 = vmul.f32 %v148_v9, %v91_v11 }
  0xcd   :  { %v83_v16 = vpop.f32.mrf.mxu0 }
  0xce   :  { %v149_v17 = vclamps-f32 %v98_v15, 0.9999999 }
  0xcf   :  { %v160_v18 = vpop.f32.mrf.mxu0 }
  0xd0   :  { %v110_v19 = vsel %vm109_vm2, %v149_v17, 0.0 }
  0xd1   :  { %111 = vadd.xlane.f32.xlu1 %v110_v19 }
 0x15a   :  { %v112_v20 = vpop.xlane.xlu1 %111 }
 0x15b   :  { %v113_v21 = vmul.f32 %v112_v20, %v112_v20  ;;  %v123_v29 = vmul.f32 0.87758255, %v112_v20 }
 0x15d   :  { %v114_v22 = vsub.f32 1.0, %v113_v21 }
 0x15f   :  { %v115_v23 = vmax.f32 %v114_v22, 0.0 }
 0x161   :  { %168 = vrsqrt.f32 %v115_v23  ;;  %vm118_vm3 = vcmp.eq.f32.partialorder %v115_v23, inf  ;;  %v121_v26 = vand.u32 2147483648, %v115_v23  ;;  %vm120_vm4 = vcmp.eq.f32.partialorder %v115_v23, 0.0 }
 0x16e   :  { %v169_v24 = vpop.eup %168 }
 0x16f   :  { %v117_v25 = vmul.f32 %v169_v24, %v115_v23 }
 0x171   :  { %v119_v27 = vsel %vm118_vm3, %v115_v23, %v117_v25 }
 0x172   :  { %v122_v28 = vsel %vm120_vm4, %v121_v26, %v119_v27 }
 0x173   :  { %v124_v30 = vmul.f32 0.47942555, %v122_v28 }
 0x175   :  { %v125_v31 = vsub.f32 %v123_v29, %v124_v30 }
 0x177   :  { %v126_v32 = vsub.f32 %v125_v31, %v112_v20 }
 0x179   :  { %v127_v33 = vadd.f32 %v149_v17, %v126_v32 }
 0x17b   :  { %v128_v34 = vsel %vm109_vm2, %v127_v33, %v149_v17 }
 0x17c   :  { %v129_v35 = vmul.f32 30.0, %v128_v34 }
 0x17e   :  { %130 = vst [vmem:[#allocation2] sm:$0xff] %v129_v35 }
 0x17f   :  { %181 = shalt.err (!%p178_p4)
}
 0x180   :  { %140 = dma.vmem_to_hbm [thread:$0]  %s138_s1, 128, %s254_s5, [#allocation3]  }
 0x181   :  { %190 = dma.done.wait [#allocation3], 128  }
 0x182   :  { %191 = vsyncadd [#allocation3], 4294967168 }
 0x183   :  { %144 = vsyncpa [#allocation3], 1 }

</bundles_post_ra>
